<compile_context>
chip_gen: v5e
topology: v5e:2x2
jax: 0.10.0
libtpu: 0.0.40
codegen_flags: <defaults>
</compile_context>

<pallas_src>
import math
import functools
from dataclasses import dataclass

import jax
import jax.numpy as jnp
from jax import lax
from jax.experimental import pallas as pl
from jax.experimental.pallas import tpu as pltpu


# ----------------------------- config ---------------------------------------

@dataclass
class DeepseekConfig:
    hidden_size: int = 128
    intermediate_size: int = 256
    num_hidden_layers: int = 2
    num_attention_heads: int = 4
    num_key_value_heads: int = 4
    vocab_size: int = 512
    rms_norm_eps: float = 1e-5
    rope_theta: int = 500000
    num_experts_per_tok: int = 2
    max_seq_len: int = 64
    n_routed_experts: int = 8
    norm_topk_prob: bool = False
    moe_intermediate_size: int = 128
    n_shared_experts: int = 1


def _row_tile(M: int, target: int = 256) -> int:
    """Largest row tile <= target that evenly divides M (full M when M <= target)."""
    if M <= target:
        return M
    for t in (target, 128, 64, 32, 16, 8):
        if M % t == 0:
            return t
    return M


# ----------------------------- Pallas kernels --------------------------------

def _rmsnorm_kernel(x_ref, w_ref, o_ref, *, eps):
    x = x_ref[...].astype(jnp.float32)
    var = jnp.mean(x * x, axis=-1, keepdims=True)
    o_ref[...] = (w_ref[...] * (x * lax.rsqrt(var + eps))).astype(o_ref.dtype)


def pallas_rmsnorm(x, w, eps):
    """x: (M, H), w: (H,) -> (M, H)."""
    M, H = x.shape
    tm = _row_tile(M)
    return pl.pallas_call(
        functools.partial(_rmsnorm_kernel, eps=eps),
        out_shape=jax.ShapeDtypeStruct((M, H), x.dtype),
        grid_spec=pltpu.PrefetchScalarGridSpec(
            num_scalar_prefetch=0,
            grid=(M // tm,),
            in_specs=[
                pl.BlockSpec((tm, H), lambda i: (i, 0)),
                pl.BlockSpec((1, H), lambda i: (0, 0)),
            ],
            out_specs=pl.BlockSpec((tm, H), lambda i: (i, 0)),
        ),
        compiler_params=pltpu.CompilerParams(dimension_semantics=("parallel",)),
    )(x, w.reshape(1, H))


def _rmsnorm_matmul_kernel(x_ref, w_ref, wm_ref, o_ref, *, eps):
    # fused RMSNorm followed by a projection (used for the QKV projection)
    x = x_ref[...].astype(jnp.float32)
    var = jnp.mean(x * x, axis=-1, keepdims=True)
    xn = (x * lax.rsqrt(var + eps)) * w_ref[...]
    o_ref[...] = jnp.dot(xn, wm_ref[...],
                         preferred_element_type=jnp.float32).astype(o_ref.dtype)


def pallas_rmsnorm_matmul(x, ln_w, w, eps):
    """x: (M, H), ln_w: (H,), w: (H, N) -> (M, N) == rmsnorm(x) @ w."""
    M, H = x.shape
    N = w.shape[1]
    tm = _row_tile(M)
    return pl.pallas_call(
        functools.partial(_rmsnorm_matmul_kernel, eps=eps),
        out_shape=jax.ShapeDtypeStruct((M, N), x.dtype),
        grid_spec=pltpu.PrefetchScalarGridSpec(
            num_scalar_prefetch=0,
            grid=(M // tm,),
            in_specs=[
                pl.BlockSpec((tm, H), lambda i: (i, 0)),
                pl.BlockSpec((1, H), lambda i: (0, 0)),
                pl.BlockSpec((H, N), lambda i: (0, 0)),
            ],
            out_specs=pl.BlockSpec((tm, N), lambda i: (i, 0)),
        ),
        compiler_params=pltpu.CompilerParams(dimension_semantics=("parallel",)),
    )(x, ln_w.reshape(1, H), w)


def _rmsnorm_gate_kernel(x_ref, w_ref, gw_ref, xn_ref, logit_ref, *, eps):
    # fused RMSNorm + MoE gate logits (two outputs; avoids an extra x round-trip
    # and a standalone tiny-N matmul kernel launch)
    x = x_ref[...].astype(jnp.float32)
    var = jnp.mean(x * x, axis=-1, keepdims=True)
    xn = (x * lax.rsqrt(var + eps)) * w_ref[...]
    xn_ref[...] = xn.astype(xn_ref.dtype)
    logit_ref[...] = jnp.dot(xn, gw_ref[...],
                             preferred_element_type=jnp.float32).astype(logit_ref.dtype)


def pallas_rmsnorm_gate(x, ln_w, gate_w, eps):
    """x: (M, H) -> (rmsnorm(x): (M, H), gate logits: (M, E))."""
    M, H = x.shape
    E = gate_w.shape[1]
    tm = _row_tile(M)
    return pl.pallas_call(
        functools.partial(_rmsnorm_gate_kernel, eps=eps),
        out_shape=(jax.ShapeDtypeStruct((M, H), x.dtype),
                   jax.ShapeDtypeStruct((M, E), jnp.float32)),
        grid_spec=pltpu.PrefetchScalarGridSpec(
            num_scalar_prefetch=0,
            grid=(M // tm,),
            in_specs=[
                pl.BlockSpec((tm, H), lambda i: (i, 0)),
                pl.BlockSpec((1, H), lambda i: (0, 0)),
                pl.BlockSpec((H, E), lambda i: (0, 0)),
            ],
            out_specs=[pl.BlockSpec((tm, H), lambda i: (i, 0)),
                       pl.BlockSpec((tm, E), lambda i: (i, 0))],
        ),
        compiler_params=pltpu.CompilerParams(dimension_semantics=("parallel",)),
    )(x, ln_w.reshape(1, H), gate_w)


def _matmul_residual_kernel(x_ref, w_ref, r_ref, o_ref):
    acc = jnp.dot(x_ref[...].astype(jnp.float32), w_ref[...],
                  preferred_element_type=jnp.float32)
    o_ref[...] = (r_ref[...].astype(jnp.float32) + acc).astype(o_ref.dtype)


def pallas_matmul_residual(x, w, residual):
    """residual + x @ w. x: (M, K), w: (K, N), residual: (M, N) -> (M, N)."""
    M, K = x.shape
    N = w.shape[1]
    tm = _row_tile(M)
    return pl.pallas_call(
        _matmul_residual_kernel,
        out_shape=jax.ShapeDtypeStruct((M, N), x.dtype),
        grid_spec=pltpu.PrefetchScalarGridSpec(
            num_scalar_prefetch=0,
            grid=(M // tm,),
            in_specs=[
                pl.BlockSpec((tm, K), lambda i: (i, 0)),
                pl.BlockSpec((K, N), lambda i: (0, 0)),
                pl.BlockSpec((tm, N), lambda i: (i, 0)),
            ],
            out_specs=pl.BlockSpec((tm, N), lambda i: (i, 0)),
        ),
        compiler_params=pltpu.CompilerParams(dimension_semantics=("parallel",)),
    )(x, w, residual)


def _attention_kernel(qkv_ref, cos_ref, sin_ref, o_ref, *, nh, nkv, hd, scale):
    # One batch per grid step; RoPE + causal softmax(QK^T * scale) V for all heads,
    # written back as a single lane-dense (S, nh*hd) block.
    S = qkv_ref.shape[1]
    qkv = qkv_ref[0].astype(jnp.float32)            # (S, (nh + 2*nkv) * hd)
    cos = cos_ref[...].astype(jnp.float32)          # (S, hd)
    sin = sin_ref[...].astype(jnp.float32)          # (S, hd)
    groups = nh // nkv
    half = hd // 2

    def rope(x):                                     # x: (S, hd)
        # rotate_half(x) = concat(-x[:, half:], x[:, :half])
        rot = jnp.concatenate([-x[:, half:], x[:, :half]], axis=-1)
        return x * cos + rot * sin

    # rotate K and gather V once per KV head (no jnp.repeat / repeat_kv needed)
    k_rot, v_all = [], []
    for kh in range(nkv):
        k_rot.append(rope(qkv[:, (nh + kh) * hd:(nh + kh + 1) * hd]))
        v_all.append(qkv[:, (nh + nkv + kh) * hd:(nh + nkv + kh + 1) * hd])

    row = lax.broadcasted_iota(jnp.int32, (S, S), 0)
    col = lax.broadcasted_iota(jnp.int32, (S, S), 1)
    causal = col <= row

    outs = []
    for h in range(nh):
        q_h = rope(qkv[:, h * hd:(h + 1) * hd])
        kh = h // groups
        scores = lax.dot_general(q_h, k_rot[kh], (((1,), (1,)), ((), ())),
                                 preferred_element_type=jnp.float32) * scale
        scores = jnp.where(causal, scores, -1e30)
        m = jnp.max(scores, axis=-1, keepdims=True)
        p = jnp.exp(scores - m)
        l = jnp.sum(p, axis=-1, keepdims=True)
        outs.append(jnp.dot(p * pl.reciprocal(l, approx=True), v_all[kh],
                            preferred_element_type=jnp.float32))
    o_ref[0] = jnp.concatenate(outs, axis=-1).astype(o_ref.dtype)


def pallas_attention(qkv, cos, sin, nh, nkv, hd):
    """qkv: (B, S, (nh+2*nkv)*hd) -> (B, S, nh*hd), fused RoPE + causal attention."""
    B, S, Dqkv = qkv.shape
    Ho = nh * hd
    scale = 1.0 / math.sqrt(hd)
    return pl.pallas_call(
        functools.partial(_attention_kernel, nh=nh, nkv=nkv, hd=hd, scale=scale),
        out_shape=jax.ShapeDtypeStruct((B, S, Ho), qkv.dtype),
        grid_spec=pltpu.PrefetchScalarGridSpec(
            num_scalar_prefetch=0,
            grid=(B,),
            in_specs=[
                pl.BlockSpec((1, S, Dqkv), lambda b: (b, 0, 0)),
                pl.BlockSpec((S, hd), lambda b: (0, 0)),
                pl.BlockSpec((S, hd), lambda b: (0, 0)),
            ],
            out_specs=pl.BlockSpec((1, S, Ho), lambda b: (b, 0, 0)),
        ),
        compiler_params=pltpu.CompilerParams(dimension_semantics=("parallel",)),
    )(qkv, cos, sin)


def _moe_kernel(x_ref, gw_ref, uw_ref, dw_ref, comb_ref, r_ref, o_ref, acc_ref):
    # grid = (row_tiles, experts); expert axis is the innermost 'arbitrary' reduction,
    # accumulated in a VMEM f32 scratch that is initialized with the residual.
    e = pl.program_id(1)

    @pl.when(e == 0)
    def _():
        acc_ref[...] = r_ref[...].astype(jnp.float32)

    x = x_ref[...].astype(jnp.float32)
    g = jnp.dot(x, gw_ref[0], preferred_element_type=jnp.float32)
    u = jnp.dot(x, uw_ref[0], preferred_element_type=jnp.float32)
    h = (g * jax.nn.sigmoid(g)) * u
    y = jnp.dot(h, dw_ref[0], preferred_element_type=jnp.float32)
    acc_ref[...] += comb_ref[0] * y

    @pl.when(e == pl.num_programs(1) - 1)
    def _():
        o_ref[...] = acc_ref[...].astype(o_ref.dtype)


def pallas_moe(x, gw_all, uw_all, dw_all, comb_t, residual):
    """Fused MoE: out[t] = residual[t] + sum_e comb[e, t] * SwiGLU_e(x[t]).

    x:        (M, H)
    gw_all / uw_all: (E_total, H, MI);  dw_all: (E_total, MI, H)
    comb_t:   (E_total, M, 1) combine weights (0 if expert not routed for a token;
              shared-expert rows are 1.0)
    residual: (M, H)
    """
    # TODO(synk): routed experts are computed densely (every expert over every token,
    # masked by the combine weight) — numerically identical to moe_infer's sparse
    # scatter dispatch; scalar-prefetch group-offset dispatch is a perf-only follow-up.
    M, H = x.shape
    E_total, _, MI = gw_all.shape
    tm = _row_tile(M)
    return pl.pallas_call(
        _moe_kernel,
        out_shape=jax.ShapeDtypeStruct((M, H), x.dtype),
        grid_spec=pltpu.PrefetchScalarGridSpec(
            num_scalar_prefetch=0,
            grid=(M // tm, E_total),
            in_specs=[
                pl.BlockSpec((tm, H), lambda i, e: (i, 0)),
                pl.BlockSpec((1, H, MI), lambda i, e: (e, 0, 0)),
                pl.BlockSpec((1, H, MI), lambda i, e: (e, 0, 0)),
                pl.BlockSpec((1, MI, H), lambda i, e: (e, 0, 0)),
                pl.BlockSpec((1, tm, 1), lambda i, e: (e, i, 0)),
                pl.BlockSpec((tm, H), lambda i, e: (i, 0)),
            ],
            out_specs=pl.BlockSpec((tm, H), lambda i, e: (i, 0)),
            scratch_shapes=[pltpu.VMEM((tm, H), jnp.float32)],
        ),
        compiler_params=pltpu.CompilerParams(
            dimension_semantics=("parallel", "arbitrary")),
    )(x, gw_all, uw_all, dw_all, comb_t, residual)


# ----------------------------- glue (plain JAX) -------------------------------

def rope_cache(seq_len, dim, base):
    inv_freq = 1.0 / (base ** (jnp.arange(0, dim, 2, dtype=jnp.float32) / dim))
    t = jnp.arange(seq_len, dtype=jnp.float32)
    freqs = jnp.outer(t, inv_freq)
    emb = jnp.concatenate([freqs, freqs], axis=-1)
    return jnp.cos(emb), jnp.sin(emb)                 # each (S, dim)


def decoder_layer(h, p, cfg, cos, sin):
    B, S, H = h.shape
    M = B * S
    nh, nkv = cfg.num_attention_heads, cfg.num_key_value_heads
    hd = H // nh
    h2 = h.reshape(M, H)

    # ---- self attention ----
    qkv = pallas_rmsnorm_matmul(h2, p['ln1'], p['wqkv'], cfg.rms_norm_eps)
    attn = pallas_attention(qkv.reshape(B, S, -1), cos, sin, nh, nkv, hd)  # (B,S,H)
    h2 = pallas_matmul_residual(attn.reshape(M, nh * hd), p['wo'], h2)     # (M, H)

    # ---- MoE MLP ----
    x_norm, logits = pallas_rmsnorm_gate(h2, p['ln2'], p['gate_w'], cfg.rms_norm_eps)
    scores = jax.nn.softmax(logits, axis=-1)
    topk_w, topk_idx = lax.top_k(scores, cfg.num_experts_per_tok)
    if cfg.norm_topk_prob and cfg.num_experts_per_tok > 1:
        topk_w = topk_w / (jnp.sum(topk_w, axis=-1, keepdims=True) + 1e-20)
    E = cfg.n_routed_experts
    onehot = jax.nn.one_hot(topk_idx, E, dtype=x_norm.dtype)      # (M, k, E)
    comb = jnp.einsum('mk,mke->me', topk_w, onehot)               # (M, E)
    # shared-expert chunks folded in as extra experts with combine weight 1.0
    n_extra = p['expert_gw'].shape[0] - E
    comb = jnp.concatenate([comb, jnp.ones((M, n_extra), comb.dtype)], axis=1)
    comb_t = comb.T[:, :, None]                                   # (E_total, M, 1)
    # (aux_loss only affects backward via AddAuxiliaryLoss; forward output unchanged)
    h2 = pallas_moe(x_norm, p['expert_gw'], p['expert_uw'], p['expert_dw'],
                    comb_t, h2)
    return h2.reshape(B, S, H)


def deepseek_forward(params, input_ids, cfg):
    B, S = input_ids.shape
    H = cfg.hidden_size
    h = params['embed'][input_ids]                                # (B, S, H)
    cos, sin = rope_cache(S, H // cfg.num_attention_heads, cfg.rope_theta)
    for lp in params['layers']:
        h = decoder_layer(h, lp, cfg, cos, sin)
    h = pallas_rmsnorm(h.reshape(B * S, H), params['final_norm'],
                       cfg.rms_norm_eps).reshape(B, S, H)
    return h


# ----------------------------- params ----------------------------------------

def init_params(cfg, key):
    H = cfg.hidden_size
    MI = cfg.moe_intermediate_size
    E = cfg.n_routed_experts
    nh, nkv = cfg.num_attention_heads, cfg.num_key_value_heads
    hd = H // nh
    ns = cfg.n_shared_experts

    def dense(k, shape, scale=0.02):
        return scale * jax.random.normal(k, shape, dtype=jnp.float32)

    keys = jax.random.split(key, 1 + cfg.num_hidden_layers)
    params = {
        'embed': dense(keys[0], (cfg.vocab_size, H)),
        'final_norm': jnp.ones((H,), jnp.float32),
        'layers': [],
    }
    for li in range(cfg.num_hidden_layers):
        lk = jax.random.split(keys[1 + li], 9)
        shared_I = MI * ns
        # Shared expert split into `ns` chunks of intermediate width MI so it can be
        # stacked with the routed experts (SwiGLU is elementwise over the intermediate
        # dim and down_proj sums over it, so the chunk-sum is mathematically identical).
        sh_g = dense(lk[5], (H, shared_I)).reshape(H, ns, MI).transpose(1, 0, 2)
        sh_u = dense(lk[6], (H, shared_I)).reshape(H, ns, MI).transpose(1, 0, 2)
        sh_d = dense(lk[7], (shared_I, H)).reshape(ns, MI, H)
        rk = jax.random.split(lk[8], 3)
        lp = {
            'ln1': jnp.ones((H,), jnp.float32),
            'ln2': jnp.ones((H,), jnp.float32),
            # fused q/k/v projection weight: (H, (nh + 2*nkv) * hd)
            'wqkv': jnp.concatenate(
                [dense(lk[0], (H, nh * hd)),
                 dense(lk[1], (H, nkv * hd)),
                 dense(lk[2], (H, nkv * hd))], axis=1),
            'wo': dense(lk[3], (nh * hd, H)),
            'gate_w': dense(lk[4], (H, E)),
            # routed experts stacked; shared expert chunks appended as the last `ns`
            'expert_gw': jnp.concatenate([dense(rk[0], (E, H, MI)), sh_g], axis=0),
            'expert_uw': jnp.concatenate([dense(rk[1], (E, H, MI)), sh_u], axis=0),
            'expert_dw': jnp.concatenate([dense(rk[2], (E, MI, H)), sh_d], axis=0),
        }
        params['layers'].append(lp)
    return params


# ----------------------------- main -------------------------------------------

if __name__ == "__main__":
    cfg = DeepseekConfig(
        hidden_size=128, intermediate_size=256, num_hidden_layers=2,
        num_attention_heads=4, num_key_value_heads=4, vocab_size=512,
        rms_norm_eps=1e-5, rope_theta=500000, num_experts_per_tok=2,
        max_seq_len=64, n_routed_experts=8, moe_intermediate_size=128,
        n_shared_experts=1, norm_topk_prob=False)

    key = jax.random.PRNGKey(0)
    pkey, ikey = jax.random.split(key)
    params = init_params(cfg, pkey)

    B, S = 2, 16
    input_ids = jax.random.randint(ikey, (B, S), 0, cfg.vocab_size)

    out = deepseek_forward(params, input_ids, cfg)
    out = jax.block_until_ready(out)
    assert out.shape == (B, S, cfg.hidden_size)
    assert bool(jnp.all(jnp.isfinite(out)))
    print("KERNEL_OK")
</pallas_src>

<mosaic_0001>
module attributes {stable_mosaic.version = 11 : i64} {
  func.func @_rmsnorm_matmul_kernel(%arg0: i32, %arg1: memref<32x128xf32, #tpu.memory_space<vmem>>, %arg2: memref<1x128xf32, #tpu.memory_space<vmem>>, %arg3: memref<128x384xf32, #tpu.memory_space<vmem>>, %arg4: memref<32x384xf32, #tpu.memory_space<vmem>>) attributes {dimension_semantics = [#tpu.dimension_semantics<parallel>], iteration_bounds = array<i64: 1>, scalar_prefetch = 0 : i64, scratch_operands = 0 : i64, tpu.core_type = #tpu.core_type<tc>, window_params = [{transform_indices = @transform_0, window_bounds = array<i64: 32, 128>}, {pipeline_mode = #tpu.pipeline_mode<synchronous>, transform_indices = @transform_1, window_bounds = array<i64: 1, 128>}, {pipeline_mode = #tpu.pipeline_mode<synchronous>, transform_indices = @transform_2, window_bounds = array<i64: 128, 384>}, {transform_indices = @transform_3, window_bounds = array<i64: 32, 384>}]} {
    %c0 = arith.constant 0 : index
    %c0_0 = arith.constant 0 : index
    %0 = vector.load %arg1[%c0, %c0_0] : memref<32x128xf32, #tpu.memory_space<vmem>>, vector<32x128xf32>
    %1 = arith.mulf %0, %0 : vector<32x128xf32>
    %cst = arith.constant dense<0.000000e+00> : vector<32xf32>
    %2 = vector.multi_reduction <add>, %1, %cst [1] : vector<32x128xf32> to vector<32xf32>
    %3 = vector.shape_cast %2 : vector<32xf32> to vector<32x1xf32>
    %cst_1 = arith.constant 1.280000e+02 : f32
    %4 = vector.broadcast %cst_1 : f32 to vector<32x1xf32>
    %5 = arith.divf %3, %4 : vector<32x1xf32>
    %cst_2 = arith.constant 9.99999974E-6 : f32
    %6 = vector.broadcast %cst_2 : f32 to vector<32x1xf32>
    %7 = arith.addf %5, %6 : vector<32x1xf32>
    %8 = math.rsqrt %7 : vector<32x1xf32>
    %9 = vector.broadcast %8 : vector<32x1xf32> to vector<32x128xf32>
    %10 = arith.mulf %0, %9 : vector<32x128xf32>
    %c0_3 = arith.constant 0 : index
    %c0_4 = arith.constant 0 : index
    %11 = vector.load %arg2[%c0_3, %c0_4] : memref<1x128xf32, #tpu.memory_space<vmem>>, vector<1x128xf32>
    %12 = vector.broadcast %11 : vector<1x128xf32> to vector<32x128xf32>
    %13 = arith.mulf %10, %12 : vector<32x128xf32>
    %c0_5 = arith.constant 0 : index
    %c0_6 = arith.constant 0 : index
    %14 = vector.load %arg3[%c0_5, %c0_6] : memref<128x384xf32, #tpu.memory_space<vmem>>, vector<128x384xf32>
    %cst_7 = arith.constant dense<0.000000e+00> : vector<32x384xf32>
    %15 = tpu.matmul %13, %14, %cst_7 {dimension_numbers = #tpu.dot_dimension_numbers<[1], [0], [0], [1], [0, 0, 1, 1], [], []>} : vector<32x128xf32>, vector<128x384xf32>, vector<32x384xf32> -> vector<32x384xf32>
    %c0_8 = arith.constant 0 : index
    %c0_9 = arith.constant 0 : index
    %16 = vector.load %arg4[%c0_8, %c0_9] : memref<32x384xf32, #tpu.memory_space<vmem>>, vector<32x384xf32>
    tpu.vector_store %arg4[%c0_8, %c0_9], %15 {strides = array<i32>} : memref<32x384xf32, #tpu.memory_space<vmem>>, vector<32x384xf32>,
    return
  }
  func.func @transform_0(%arg0: i32) -> (i32, i32) {
    %c0_i32 = arith.constant 0 : i32
    %c0_i32_0 = arith.constant 0 : i32
    return %arg0, %c0_i32 : i32, i32
  }
  func.func @transform_1(%arg0: i32) -> (i32, i32) {
    %c0_i32 = arith.constant 0 : i32
    %c0_i32_0 = arith.constant 0 : i32
    %c0_i32_1 = arith.constant 0 : i32
    return %c0_i32, %c0_i32_0 : i32, i32
  }
  func.func @transform_2(%arg0: i32) -> (i32, i32) {
    %c0_i32 = arith.constant 0 : i32
    %c0_i32_0 = arith.constant 0 : i32
    %c0_i32_1 = arith.constant 0 : i32
    return %c0_i32, %c0_i32_0 : i32, i32
  }
  func.func @transform_3(%arg0: i32) -> (i32, i32) {
    %c0_i32 = arith.constant 0 : i32
    %c0_i32_0 = arith.constant 0 : i32
    return %arg0, %c0_i32 : i32, i32
  }
}

</mosaic_0001>

<bundles_post_ra>
// kernel: tpu_custom_call.1
= control target key start
LH: loop header
LB: loop body
LE: loop exit
PB: predicated region body
PF: predicated region fallthrough
CT: control target
= control target key end

     0   :  { %8 = vsyncpa [#allocation3], 0  ;;  %s522_s0 = inlined_call_operand.hbm [shape: f32[32,128], index: 0, kind: input, shape index: {}]   ;;  %s523_s1 = inlined_call_operand.hbm [shape: f32[1,128], index: 1, kind: input, shape index: {}]   ;;  %s524_s2 = inlined_call_operand.hbm [shape: f32[128,384], index: 2, kind: input, shape index: {}]   ;;  %s525_s3 = inlined_call_operand.hbm [shape: f32[32,384], index: 3, kind: output, shape index: {}]  }
   0x1   :  { %9 = vsyncpa [#allocation6], 0  ;;  %s29_s14 = sshll.u32 %s523_s1, 4  ;;  %s30_s14 = int_to_ptr.hbm [resolvable:$true] %s29_s14 }
   0x2   :  { %10 = vsyncpa [#allocation4], 0  ;;  %s448_s15 = smov [#allocation5]   ;;  %s15_s19 = sshll.u32 %s522_s0, 4  ;;  %s16_s19 = int_to_ptr.hbm [resolvable:$true] %s15_s19 }
   0x3   :  { %s31_s16 = sshll.u32 %s448_s15, 4  ;;  %s449_s20 = smov [#allocation2]   ;;  %s32_s16 = int_to_ptr.vmem [resolvable:$true] %s31_s16 }
   0x4   :  { %34 = dma.hbm_to_vmem [thread:$0]  %s30_s14, 16, %s32_s16, [#allocation6]  }
   0x5   :  { %s17_s21 = sshll.u32 %s449_s20, 4  ;;  %s450_s22 = smov 128   ;;  %s18_s21 = int_to_ptr.vmem [resolvable:$true] %s17_s21 }
   0x6   :  { %s451_s23 = smov 8   ;;  %s39_s1 = sshll.u32 %s524_s2, 4  ;;  %s40_s1 = int_to_ptr.hbm [resolvable:$true] %s39_s1 }
   0x7   :  { %23 = dma.hbm_to_vmem [thread:$0]  %s16_s19, 512, %s18_s21, [#allocation3], %s450_s22, %s450_s22, %s451_s23  }
   0x8   :  { %s452_s26 = smov [#allocation7]   ;;  %s453_s28 = smov 384  }
   0x9   :  { %s41_s27 = sshll.u32 %s452_s26, 4  ;;  %s454_s29 = smov 24   ;;  %s42_s27 = int_to_ptr.vmem [resolvable:$true] %s41_s27 }
   0xa   :  { %47 = dma.hbm_to_vmem [thread:$0]  %s40_s1, 6144, %s42_s27, [#allocation6], %s453_s28, %s453_s28, %s454_s29  }
   0xb   :  { %442 = dma.done.wait [#allocation3], 512  }
   0xc   :  { %443 = vsyncadd [#allocation3], 4294966784 }
   0xd   :  { %444 = dma.done.wait [#allocation6], 6160  }
   0xe   :  { %445 = vsyncadd [#allocation6], 4294961136  ;;  %v489_v0 = vld [vmem:[#allocation2] sm:$0xff]  ;;  %v491_v1 = vld [vmem:[#allocation2 + $0x10] sm:$0xff]  ;;  %v455_v23 = vmov 128.0   ;;  %s456_s0 = smov [#allocation8]  }
   0xf   :  { %v64_v2 = vmul.f32 %v489_v0, %v489_v0  ;;  %v66_v3 = vmul.f32 %v491_v1, %v491_v1  ;;  %v188_v4 = vld [vmem:[#allocation7 + $0x168] sm:$0xff]  ;;  %v189_v5 = vld [vmem:[#allocation7 + $0x170] sm:$0xff]  ;;  %v190_v6 = vld [vmem:[#allocation7 + $0x178] sm:$0xff]  ;;  %336 = vrcp.f32 %v455_v23  ;;  %s294_s2 = sshll.u32 %s456_s0, 4  ;;  %s296_s5 = sshll.u32 %s525_s3, 4  ;;  %s295_s2 = int_to_ptr.vmem [resolvable:$true] %s294_s2  ;;  %s297_s5 = int_to_ptr.hbm [resolvable:$true] %s296_s5 }
  0x10   :  { %191 = vmatpush.msra.mxu0 %v188_v4  ;;  %220 = vmatpush.msra.mxu1 %v189_v5  ;;  %v185_v7 = vld [vmem:[#allocation7 + $0x150] sm:$0xff]  ;;  %v186_v8 = vld [vmem:[#allocation7 + $0x158] sm:$0xff]  ;;  %v497_v9 = vld [vmem:[#allocation2 + $0x8] sm:$0xff] }
  0x11   :  { %68 = vadd.xlane.f32.xlu0 %v64_v2  ;;  %72 = vadd.xlane.f32.xlu1 %v66_v3  ;;  %v187_v10 = vld [vmem:[#allocation7 + $0x160] sm:$0xff]  ;;  %v182_v11 = vld [vmem:[#allocation7 + $0x138] sm:$0xff]  ;;  %v184_v14 = vld [vmem:[#allocation7 + $0x148] sm:$0xff]  ;;  %v65_v15 = vmul.f32 %v497_v9, %v497_v9 }
  0x12   :  { %v499_v12 = vld [vmem:[#allocation2 + $0x18] sm:$0xff]  ;;  %249 = vmatpush.msra.mxu2 %v190_v6  ;;  %192 = vmatpush.msra.mxu0 %v185_v7  ;;  %v183_v13 = vld [vmem:[#allocation7 + $0x140] sm:$0xff]  ;;  %v180_v18 = vld [vmem:[#allocation7 + $0x128] sm:$0xff] }
  0x13   :  { %221 = vmatpush.msra.mxu1 %v186_v8  ;;  %310 = vmatpush.msra.mxu3 %v188_v4  ;;  %v67_v16 = vmul.f32 %v499_v12, %v499_v12  ;;  %v179_v17 = vld [vmem:[#allocation7 + $0x120] sm:$0xff]  ;;  %v181_v19 = vld [vmem:[#allocation7 + $0x130] sm:$0xff]  ;;  %v176_v20 = vld [vmem:[#allocation7 + $0x108] sm:$0xff] }
  0x14   :  { %250 = vmatpush.msra.mxu2 %v187_v10  ;;  %193 = vmatpush.msra.mxu0 %v182_v11  ;;  %v177_v21 = vld [vmem:[#allocation7 + $0x110] sm:$0xff]  ;;  %v178_v22 = vld [vmem:[#allocation7 + $0x118] sm:$0xff]  ;;  %v175_v26 = vld [vmem:[#allocation7 + $0x100] sm:$0xff] }
  0x15   :  { %222 = vmatpush.msra.mxu1 %v183_v13  ;;  %311 = vmatpush.msra.mxu3 %v185_v7  ;;  %v173_v24 = vld [vmem:[#allocation7 + $0xf0] sm:$0xff]  ;;  %v174_v25 = vld [vmem:[#allocation7 + $0xf8] sm:$0xff]  ;;  %v171_v28 = vld [vmem:[#allocation7 + $0xe0] sm:$0xff]  ;;  %v505_v33 = vpop.eup %336 }
  0x16   :  { %251 = vmatpush.msra.mxu2 %v184_v14  ;;  %194 = vmatpush.msra.mxu0 %v179_v17  ;;  %v170_v27 = vld [vmem:[#allocation7 + $0xd8] sm:$0xff]  ;;  %v172_v29 = vld [vmem:[#allocation7 + $0xe8] sm:$0xff]  ;;  %v167_v30 = vld [vmem:[#allocation7 + $0xc0] sm:$0xff]  ;;  %v77_v40 = vmul.f32 128.0, %v505_v33  ;;  %vm81_vm0 = vweird.f32 %v505_v33 }
  0x17   :  { %312 = vmatpush.msra.mxu3 %v182_v11  ;;  %223 = vmatpush.msra.mxu1 %v180_v18  ;;  %v168_v31 = vld [vmem:[#allocation7 + $0xc8] sm:$0xff]  ;;  %v169_v32 = vld [vmem:[#allocation7 + $0xd0] sm:$0xff]  ;;  %v166_v36 = vld [vmem:[#allocation7 + $0xb8] sm:$0xff] }
  0x18   :  { %252 = vmatpush.msra.mxu2 %v181_v19  ;;  %195 = vmatpush.msra.mxu0 %v176_v20  ;;  %v164_v34 = vld [vmem:[#allocation7 + $0xa8] sm:$0xff]  ;;  %v165_v35 = vld [vmem:[#allocation7 + $0xb0] sm:$0xff]  ;;  %v162_v38 = vld [vmem:[#allocation7 + $0x98] sm:$0xff]  ;;  %v78_v47 = vsub.f32 1.0, %v77_v40 }
  0x19   :  { %70 = vadd.xlane.f32.xlu0 %v65_v15  ;;  %74 = vadd.xlane.f32.xlu1 %v67_v16  ;;  %v161_v37 = vld [vmem:[#allocation7 + $0x90] sm:$0xff]  ;;  %v163_v39 = vld [vmem:[#allocation7 + $0xa0] sm:$0xff]  ;;  %v158_v41 = vld [vmem:[#allocation7 + $0x78] sm:$0xff] }
  0x1a   :  { %313 = vmatpush.msra.mxu3 %v179_v17  ;;  %224 = vmatpush.msra.mxu1 %v177_v21  ;;  %v159_v42 = vld [vmem:[#allocation7 + $0x80] sm:$0xff]  ;;  %v160_v43 = vld [vmem:[#allocation7 + $0x88] sm:$0xff]  ;;  %v157_v46 = vld [vmem:[#allocation7 + $0x70] sm:$0xff]  ;;  %v79_v54 = vmul.f32 %v505_v33, %v78_v47 }
  0x1b   :  { %253 = vmatpush.msra.mxu2 %v178_v22  ;;  %196 = vmatpush.msra.mxu0 %v173_v24  ;;  %v155_v44 = vld [vmem:[#allocation7 + $0x60] sm:$0xff]  ;;  %v156_v45 = vld [vmem:[#allocation7 + $0x68] sm:$0xff]  ;;  %v153_v49 = vld [vmem:[#allocation7 + $0x50] sm:$0xff] }
  0x1c   :  { %314 = vmatpush.msra.mxu3 %v176_v20  ;;  %225 = vmatpush.msra.mxu1 %v174_v25  ;;  %v152_v48 = vld [vmem:[#allocation7 + $0x48] sm:$0xff]  ;;  %v154_v50 = vld [vmem:[#allocation7 + $0x58] sm:$0xff]  ;;  %v149_v51 = vld [vmem:[#allocation7 + $0x30] sm:$0xff]  ;;  %v80_v61 = vadd.f32 %v505_v33, %v79_v54 }
  0x1d   :  { %254 = vmatpush.msra.mxu2 %v175_v26  ;;  %197 = vmatpush.msra.mxu0 %v170_v27  ;;  %v150_v52 = vld [vmem:[#allocation7 + $0x38] sm:$0xff]  ;;  %v151_v53 = vld [vmem:[#allocation7 + $0x40] sm:$0xff]  ;;  %v148_v57 = vld [vmem:[#allocation7 + $0x28] sm:$0xff] }
  0x1e   :  { %315 = vmatpush.msra.mxu3 %v173_v24  ;;  %226 = vmatpush.msra.mxu1 %v171_v28  ;;  %v146_v55 = vld [vmem:[#allocation7 + $0x18] sm:$0xff]  ;;  %v147_v56 = vld [vmem:[#allocation7 + $0x20] sm:$0xff]  ;;  %v144_v59 = vld [vmem:[#allocation7 + $0x8] sm:$0xff]  ;;  %v82_v62 = vsel %vm81_vm0, %v505_v33, %v80_v61 }
  0x1f   :  { %255 = vmatpush.msra.mxu2 %v172_v29  ;;  %198 = vmatpush.msra.mxu0 %v167_v30  ;;  %v143_v58 = vld [vmem:[#allocation7] sm:$0xff]  ;;  %v145_v60 = vld [vmem:[#allocation7 + $0x10] sm:$0xff] }
  0x20   :  { %316 = vmatpush.msra.mxu3 %v170_v27  ;;  %227 = vmatpush.msra.mxu1 %v168_v31  ;;  %v335_v27 = vld [vmem:[#allocation5] ss:$0 sm:$0xff] }
  0x21   :  { %256 = vmatpush.msra.mxu2 %v169_v32  ;;  %199 = vmatpush.msra.mxu0 %v164_v34 }
  0x22   :  { %317 = vmatpush.msra.mxu3 %v167_v30  ;;  %228 = vmatpush.msra.mxu1 %v165_v35 }
  0x23   :  { %257 = vmatpush.msra.mxu2 %v166_v36  ;;  %200 = vmatpush.msra.mxu0 %v161_v37 }
  0x24   :  { %318 = vmatpush.msra.mxu3 %v164_v34  ;;  %229 = vmatpush.msra.mxu1 %v162_v38 }
  0x25   :  { %258 = vmatpush.msra.mxu2 %v163_v39  ;;  %201 = vmatpush.msra.mxu0 %v158_v41 }
  0x26   :  { %319 = vmatpush.msra.mxu3 %v161_v37  ;;  %230 = vmatpush.msra.mxu1 %v159_v42 }
  0x27   :  { %259 = vmatpush.msra.mxu2 %v160_v43  ;;  %202 = vmatpush.msra.mxu0 %v155_v44 }
  0x28   :  { %320 = vmatpush.msra.mxu3 %v158_v41  ;;  %231 = vmatpush.msra.mxu1 %v156_v45 }
  0x29   :  { %260 = vmatpush.msra.mxu2 %v157_v46  ;;  %203 = vmatpush.msra.mxu0 %v152_v48 }
  0x2a   :  { %321 = vmatpush.msra.mxu3 %v155_v44  ;;  %232 = vmatpush.msra.mxu1 %v153_v49 }
  0x2b   :  { %261 = vmatpush.msra.mxu2 %v154_v50  ;;  %204 = vmatpush.msra.mxu0 %v149_v51 }
  0x2c   :  { %322 = vmatpush.msra.mxu3 %v152_v48  ;;  %233 = vmatpush.msra.mxu1 %v150_v52 }
  0x2d   :  { %262 = vmatpush.msra.mxu2 %v151_v53  ;;  %205 = vmatpush.msra.mxu0 %v146_v55 }
  0x2e   :  { %323 = vmatpush.msra.mxu3 %v149_v51  ;;  %234 = vmatpush.msra.mxu1 %v147_v56 }
  0x2f   :  { %263 = vmatpush.msra.mxu2 %v148_v57  ;;  %206 = vmatpush.msra.mxu0 %v143_v58 }
  0x30   :  { %324 = vmatpush.msra.mxu3 %v146_v55  ;;  %235 = vmatpush.msra.mxu1 %v144_v59 }
  0x31   :  { %264 = vmatpush.msra.mxu2 %v145_v60 }
  0x32   :  { %325 = vmatpush.msra.mxu3 %v143_v58 }
  0x84   :  { %v69_v63 = vpop.xlane.xlu0 %68  ;;  %v73_v2 = vpop.xlane.xlu1 %72 }
  0x85   :  { %v83_v3 = vmul.f32 %v82_v62, %v69_v63  ;;  %v85_v4 = vmul.f32 %v82_v62, %v73_v2 }
  0x87   :  { %v87_v5 = vadd.f32 1e-05, %v83_v3  ;;  %v89_v6 = vadd.f32 1e-05, %v85_v4 }
  0x89   :  { %338 = vrsqrt.f32 %v87_v5  ;;  %vm97_vm2 = vweird.f32 %v87_v5  ;;  %vm117_vm5 = vweird.f32 %v89_v6 }
  0x8a   :  { %340 = vrsqrt.f32 %v89_v6 }
  0x8c   :  { %v71_v7 = vpop.xlane.xlu0 %70  ;;  %v75_v8 = vpop.xlane.xlu1 %74 }
  0x8d   :  { %v84_v10 = vmul.f32 %v82_v62, %v71_v7  ;;  %v86_v11 = vmul.f32 %v82_v62, %v75_v8 }
  0x8f   :  { %v339_v13 = vpop.eup %338  ;;  %v88_v14 = vadd.f32 1e-05, %v84_v10  ;;  %v90_v15 = vadd.f32 1e-05, %v86_v11 }
  0x90   :  { %v341_v16 = vpop.eup %340  ;;  %v92_v17 = vmul.f32 %v339_v13, %v87_v5  ;;  %vm98_vm1 = vweird.f32 %v339_v13 }
  0x91   :  { %342 = vrsqrt.f32 %v88_v14  ;;  %v112_v19 = vmul.f32 %v341_v16, %v89_v6  ;;  %vm99_vm3 = vmor %vm97_vm2, %vm98_vm1  ;;  %vm118_vm6 = vweird.f32 %v341_v16  ;;  %vm107_vm7 = vweird.f32 %v88_v14 }
  0x92   :  { %v93_v18 = vmul.f32 %v339_v13, %v92_v17  ;;  %344 = vrsqrt.f32 %v90_v15  ;;  %vm119_vm9 = vmor %vm117_vm5, %vm118_vm6  ;;  %vm127_vm10 = vweird.f32 %v90_v15 }
  0x93   :  { %v113_v22 = vmul.f32 %v341_v16, %v112_v19 }
  0x94   :  { %v94_v20 = vmul.f32 0.5, %v93_v18 }
  0x95   :  { %v114_v28 = vmul.f32 0.5, %v113_v22 }
  0x96   :  { %v95_v21 = vsub.f32 1.5, %v94_v20 }
  0x97   :  { %v343_v23 = vpop.eup %342  ;;  %v115_v35 = vsub.f32 1.5, %v114_v28 }
  0x98   :  { %v345_v24 = vpop.eup %344  ;;  %v96_v25 = vmul.f32 %v339_v13, %v95_v21  ;;  %v102_v26 = vmul.f32 %v343_v23, %v88_v14  ;;  %vm108_vm4 = vweird.f32 %v343_v23 }
  0x99   :  { %v122_v30 = vmul.f32 %v345_v24, %v90_v15  ;;  %vm109_vm8 = vmor %vm107_vm7, %vm108_vm4  ;;  %v116_v39 = vmul.f32 %v341_v16, %v115_v35  ;;  %vm128_vm11 = vweird.f32 %v345_v24 }
  0x9a   :  { %v103_v29 = vmul.f32 %v343_v23, %v102_v26  ;;  %v100_v31 = vsel %vm99_vm3, %v339_v13, %v96_v25  ;;  %vm129_vm12 = vmor %vm127_vm10, %vm128_vm11 }
  0x9b   :  { %v131_v32 = vmul.f32 %v100_v31, %v489_v0  ;;  %v123_v37 = vmul.f32 %v345_v24, %v122_v30  ;;  %v120_v44 = vsel %vm119_vm9, %v341_v16, %v116_v39 }
  0x9c   :  { %v104_v33 = vmul.f32 0.5, %v103_v29  ;;  %v133_v45 = vmul.f32 %v120_v44, %v491_v1 }
  0x9d   :  { %v139_v34 = vmul.f32 %v335_v27, %v131_v32  ;;  %v124_v40 = vmul.f32 0.5, %v123_v37 }
  0x9e   :  { %v105_v36 = vsub.f32 1.5, %v104_v33  ;;  %v141_v47 = vmul.f32 %v335_v27, %v133_v45 }
  0x9f   :  { %207 = vmatmul.f32.vlgmr.msra.gmra.mxu0 %v139_v34  ;;  %236 = vmatmul.f32.vlgmr.msra.gmra.mxu1 %v139_v34  ;;  %v125_v43 = vsub.f32 1.5, %v124_v40 }
  0xa0   :  { %v106_v38 = vmul.f32 %v343_v23, %v105_v36  ;;  %265 = vmatmul.f32.vlgmr.msra.gmra.mxu2 %v139_v34 }
  0xa1   :  { %v126_v46 = vmul.f32 %v345_v24, %v125_v43 }
  0xa2   :  { %v110_v41 = vsel %vm109_vm8, %v343_v23, %v106_v38 }
  0xa3   :  { %v132_v0 = vmul.f32 %v110_v41, %v497_v9  ;;  %v130_v48 = vsel %vm129_vm12, %v345_v24, %v126_v46 }
  0xa4   :  { %v134_v49 = vmul.f32 %v130_v48, %v499_v12 }
  0xa5   :  { %v140_v42 = vmul.f32 %v335_v27, %v132_v0 }
  0xa6   :  { %v142_v9 = vmul.f32 %v335_v27, %v134_v49 }
  0xa7   :  { %210 = vmatmul.f32.vlgmr.msra.gmra.mxu3 %v140_v42  ;;  %239 = vmatmul.f32.gmra.mxu1 %v140_v42 }
  0xa8   :  { %268 = vmatmul.f32.gmra.mxu2 %v140_v42 }
  0xaf   :  { %213 = vmatmul.f32.gmra.mxu3 %v141_v47  ;;  %242 = vmatmul.f32.gmra.mxu1 %v141_v47 }
  0xb0   :  { %271 = vmatmul.f32.gmra.mxu2 %v141_v47 }
  0xb7   :  { %216 = vmatmul.f32.gmra.mxu3 %v142_v9  ;;  %245 = vmatmul.f32.gmra.mxu1 %v142_v9 }
  0xb8   :  { %274 = vmatmul.f32.gmra.mxu2 %v142_v9 }
 0x11c   :  { %v208_v50 = vpop.f32.mrf.mxu0  ;;  %v237_v51 = vpop.f32.mrf.mxu1 }
 0x11d   :  { %278 = vst [vmem:[#allocation8] sm:$0xff] %v208_v50 }
 0x11e   :  { %279 = vst [vmem:[#allocation8 + $0x8] sm:$0xff] %v237_v51 }
 0x123   :  { %v266_v52 = vpop.f32.mrf.mxu2 }
 0x124   :  { %280 = vst [vmem:[#allocation8 + $0x10] sm:$0xff] %v266_v52  ;;  %v240_v1 = vpop.f32.mrf.mxu1 }
 0x125   :  { %282 = vst [vmem:[#allocation8 + $0x20] sm:$0xff] %v240_v1 }
 0x12a   :  { %v211_v53 = vpop.f32.mrf.mxu3 }
 0x12b   :  { %281 = vst [vmem:[#allocation8 + $0x18] sm:$0xff] %v211_v53  ;;  %v269_v54 = vpop.f32.mrf.mxu2 }
 0x12c   :  { %283 = vst [vmem:[#allocation8 + $0x28] sm:$0xff] %v269_v54  ;;  %v243_v55 = vpop.f32.mrf.mxu1 }
 0x12d   :  { %285 = vst [vmem:[#allocation8 + $0x38] sm:$0xff] %v243_v55 }
 0x132   :  { %v214_v56 = vpop.f32.mrf.mxu3 }
 0x133   :  { %284 = vst [vmem:[#allocation8 + $0x30] sm:$0xff] %v214_v56  ;;  %v272_v12 = vpop.f32.mrf.mxu2 }
 0x134   :  { %286 = vst [vmem:[#allocation8 + $0x40] sm:$0xff] %v272_v12  ;;  %v246_v57 = vpop.f32.mrf.mxu1 }
 0x135   :  { %288 = vst [vmem:[#allocation8 + $0x50] sm:$0xff] %v246_v57 }
 0x13a   :  { %v217_v58 = vpop.f32.mrf.mxu3 }
 0x13b   :  { %287 = vst [vmem:[#allocation8 + $0x48] sm:$0xff] %v217_v58  ;;  %v275_v59 = vpop.f32.mrf.mxu2 }
 0x13c   :  { %289 = vst [vmem:[#allocation8 + $0x58] sm:$0xff] %v275_v59 }
 0x13d   :  { %302 = dma.vmem_to_hbm [thread:$0]  %s295_s2, 1536, %s297_s5, [#allocation4], %s453_s28, %s453_s28, %s454_s29  }
 0x13e   :  { %446 = dma.done.wait [#allocation4], 1536  }
 0x13f   :  { %447 = vsyncadd [#allocation4], 4294965760 }
 0x140   :  { %307 = vsyncpa [#allocation3], 1 }
 0x141   :  { %308 = vsyncpa [#allocation6], 1 }
 0x142   :  { %309 = vsyncpa [#allocation4], 1 }

</bundles_post_ra>
